<compile_context>
chip_gen: v7x
topology: tpu7x:2x2x1
jax: 0.10.0
libtpu: 0.0.40
codegen_flags: <defaults>
</compile_context>

<pallas_src>
import functools

import jax
import jax.numpy as jnp
from jax.experimental import pallas as pl
from jax.experimental.pallas import tpu as pltpu

_MAX_ACC_LANES = 2048          # cap on stats-accumulator lane width (f32)


# ---------------------------------------------------------------------------
# Hardware-aware VMEM budgets
# ---------------------------------------------------------------------------
@functools.lru_cache(maxsize=1)
def _vmem_budgets():
    """(fused/two-pass working-set budget, vmem_limit_bytes) per chip generation."""
    phys = None
    try:
        phys = pltpu.get_tpu_info().vmem_capacity_bytes
    except Exception:  # query unavailable -> be conservative (v7x-sized)
        phys = None
    if phys is None:
        phys = 64 * 1024 * 1024
    if phys >= 96 * 1024 * 1024:           # v5e / v6e: 128 MiB physical VMEM
        budget = 72 * 1024 * 1024
        limit = 100 * 1024 * 1024
    else:                                   # v7x: 64 MiB physical VMEM
        budget = 26 * 1024 * 1024
        limit = 44 * 1024 * 1024
    return budget, limit


def _channel_align(dtype):
    """Sublane packing: 8 rows/vreg for f32, 16 for bf16, 32 for int8."""
    itemsize = jnp.dtype(dtype).itemsize
    return max(8, 32 // max(itemsize, 1))


# ---------------------------------------------------------------------------
# Kernels
# ---------------------------------------------------------------------------
def _cbn_fused_kernel(x_ref, gamma_ref, beta_ref, o_ref, *, eps, inv_count):
    """Single-HBM-read path: full (N, HW) strip for a channel block is resident.

    x_ref:     (N, TC, L)   activations (channel block, full batch+spatial)
    gamma_ref: (N, TC, 1)   per-sample scale (float32)
    beta_ref:  (N, TC, 1)   per-sample shift (float32)
    """
    x = x_ref[...].astype(jnp.float32)

    # One sweep: sum and sum-of-squares together (no centered full-block temp,
    # no extra VMEM re-read of x). Reduce over batch first (VPU adds), then a
    # single cross-lane (XLU) reduce per stat.
    s_nl = jnp.sum(x, axis=0, keepdims=True)                 # (1, TC, L)
    q_nl = jnp.sum(x * x, axis=0, keepdims=True)             # (1, TC, L)
    mean = jnp.sum(s_nl, axis=2, keepdims=True) * inv_count  # (1, TC, 1)
    ex2 = jnp.sum(q_nl, axis=2, keepdims=True) * inv_count
    # E[x^2] - mean^2 can go slightly negative from cancellation; clamp.
    var = jnp.maximum(ex2 - mean * mean, 0.0)                # biased variance
    inv_std = jax.lax.rsqrt(var + eps)                       # EUP

    # Fold the conditional affine into one FMA per element.
    scale = gamma_ref[...] * inv_std                         # (N, TC, 1)
    shift = beta_ref[...] - mean * scale
    o_ref[...] = (x * scale + shift).astype(o_ref.dtype)


def _cbn_fused_kernel_nobias(x_ref, gamma_ref, o_ref, *, eps, inv_count):
    """bias=False variant: no beta operand DMA (shift = -mean*scale)."""
    x = x_ref[...].astype(jnp.float32)
    s_nl = jnp.sum(x, axis=0, keepdims=True)
    q_nl = jnp.sum(x * x, axis=0, keepdims=True)
    mean = jnp.sum(s_nl, axis=2, keepdims=True) * inv_count
    ex2 = jnp.sum(q_nl, axis=2, keepdims=True) * inv_count
    var = jnp.maximum(ex2 - mean * mean, 0.0)
    inv_std = jax.lax.rsqrt(var + eps)
    scale = gamma_ref[...] * inv_std
    shift = -(mean * scale)
    o_ref[...] = (x * scale + shift).astype(o_ref.dtype)


def _cbn_stats_kernel(x_ref, sum_ref, sq_ref, acc_s, acc_q, *, n_fold, tl_acc):
    """Pass 1: accumulate per-channel sum / sum-of-squares over (N, HW) tiles.

    grid = (C_blocks, N, L_blocks); reduction axes (N, L) are last.
    x_ref: (1, TC, TL).  Accumulators are capped at (TC, tl_acc); the input
    tile is folded lane-chunk by lane-chunk (static, aligned slices).
    Outputs sum_ref / sq_ref: (TC, 1), written at finalize.
    """
    n = pl.program_id(1)
    l = pl.program_id(2)

    @pl.when(jnp.logical_and(n == 0, l == 0))
    def _init():
        acc_s[...] = jnp.zeros_like(acc_s)
        acc_q[...] = jnp.zeros_like(acc_q)

    for j in range(n_fold):                                  # static, n_fold <= 4
        xj = x_ref[0, :, pl.ds(j * tl_acc, tl_acc)].astype(jnp.float32)
        acc_s[...] += xj
        acc_q[...] += xj * xj

    @pl.when(jnp.logical_and(n == pl.num_programs(1) - 1,
                             l == pl.num_programs(2) - 1))
    def _finalize():
        # One cross-lane reduce per channel block at the end of the strip.
        sum_ref[...] = jnp.sum(acc_s[...], axis=1, keepdims=True)
        sq_ref[...] = jnp.sum(acc_q[...], axis=1, keepdims=True)


def _cbn_affine_kernel(x_ref, scale_ref, shift_ref, o_ref):
    """Pass 2: streaming out = x * scale + shift (affine pre-folded, f32)."""
    x = x_ref[...].astype(jnp.float32)                       # (1, TC, TL)
    o_ref[...] = (x * scale_ref[...] + shift_ref[...]).astype(o_ref.dtype)


# ---------------------------------------------------------------------------
# Tiling helpers
# ---------------------------------------------------------------------------
def _divisor_tiles(dim, align, max_tile):
    """All divisors of `dim` that are multiples of `align` and <= max_tile;
    falls back to `dim` itself (block == full extent is always legal)."""
    limit = min(dim, max_tile)
    cands = [t for t in range(align, limit + 1, align) if dim % t == 0]
    if not cands:
        cands = [dim]
    return cands


def _pick_fused_channel_tile(n, c, l, itemsize, c_align, budget_bytes):
    """Largest channel tile whose resident strip fits the VMEM budget, or None.

    Prefers tiles that give an even grid of >= 4 steps (v7x megacore split +
    prefetch/writeback overlap), then >= 2 steps, then any fitting tile.
    """
    if budget_bytes <= 0:
        return None
    n_temps = 2 if itemsize >= 4 else 3      # in-kernel f32 temporaries

    def est(tc):
        blk = n * tc * l
        return (4 * blk * itemsize           # double-buffered input + output
                + n_temps * blk * 4          # f32 temps (stats sweep, affine)
                + 4 * n * tc * 4)            # gamma/beta blocks (dbl-buffered)

    cands = _divisor_tiles(c, c_align, c)
    fits = [tc for tc in cands if est(tc) <= budget_bytes]
    if not fits:
        return None
    even4 = [tc for tc in fits if (c // tc) >= 4 and (c // tc) % 2 == 0]
    multi = [tc for tc in fits if (c // tc) >= 2]
    if even4:
        return max(even4)
    if multi:
        return max(multi)
    return max(fits)


def _pick_two_pass_tiles(n, c, l, itemsize, c_align, budget_bytes):
    """(tc, tl, tl_acc) for the two-pass path; biggest tiles that fit VMEM."""
    tc_cands = _divisor_tiles(c, c_align, 256)
    tl_cands = _divisor_tiles(l, 128, 8192)
    # Prefer >= 2 channel blocks so v7x's two TensorCores both get stats work.
    multi = [t for t in tc_cands if c // t >= 2]
    if multi:
        tc_cands = multi

    def est(tc, tl):
        tl_acc = min(tl, _MAX_ACC_LANES)
        stream = 4 * tc * tl * itemsize      # dbl-buffered input + output (affine)
        temps = 2 * tc * tl * 4              # in-kernel f32 temporaries
        accs = 2 * tc * tl_acc * 4           # stats sum / sumsq accumulators
        return stream + temps + accs

    best = None
    for tc in tc_cands:
        for tl in tl_cands:
            if est(tc, tl) <= budget_bytes:
                key = (tc * tl, tl)
                if best is None or key > best[0]:
                    best = (key, tc, tl)
    if best is None:
        tc, tl = min(tc_cands), min(tl_cands)
    else:
        tc, tl = best[1], best[2]
    tl_acc = min(tl, _MAX_ACC_LANES)
    return tc, tl, tl_acc


# ---------------------------------------------------------------------------
# Wrapper
# ---------------------------------------------------------------------------
def conditional_batch_norm_2d(x, y, embed_weight, *, num_features, bias=True,
                              eps=1e-5, max_fused_block_bytes=None):
    """x: (N, C, H, W) float, y: (N,) int32 class ids, embed_weight: (K, 2C)|(K, C)."""
    N, C, H, W = x.shape
    assert C == num_features
    L = H * W
    itemsize = jnp.dtype(x.dtype).itemsize
    c_align = _channel_align(x.dtype)

    budget, vmem_limit = _vmem_budgets()
    if max_fused_block_bytes is None:
        max_fused_block_bytes = budget

    # Embedding lookup (tiny glue gather) -- keep affine params in float32.
    emb = embed_weight[y].astype(jnp.float32)                # (N, 2C) or (N, C)
    if bias:
        gamma = emb[:, :num_features]
        beta = emb[:, num_features:]
    else:
        gamma = emb
        beta = None

    # Free reshape: NCHW -> (N, C, H*W); H*W lands on the lane axis.
    # TODO(synk): when H*W is far from a multiple of 128 (e.g. 7x7), repack the
    #             lane axis (pad/fold channels into lanes) for lane density.
    x_ncl = x.reshape(N, C, L)
    inv_count = 1.0 / float(N * L)

    tc_fused = _pick_fused_channel_tile(N, C, L, itemsize, c_align,
                                        max_fused_block_bytes)

    if tc_fused is not None:
        # ----------------- fused single-read path -----------------
        gamma3 = gamma.reshape(N, C, 1)
        if bias:
            kern = functools.partial(_cbn_fused_kernel, eps=eps,
                                     inv_count=inv_count)
            operands = (x_ncl, gamma3, beta.reshape(N, C, 1))
            in_specs = [
                pl.BlockSpec((N, tc_fused, L), lambda c: (0, c, 0)),
                pl.BlockSpec((N, tc_fused, 1), lambda c: (0, c, 0)),
                pl.BlockSpec((N, tc_fused, 1), lambda c: (0, c, 0)),
            ]
        else:
            kern = functools.partial(_cbn_fused_kernel_nobias, eps=eps,
                                     inv_count=inv_count)
            operands = (x_ncl, gamma3)
            in_specs = [
                pl.BlockSpec((N, tc_fused, L), lambda c: (0, c, 0)),
                pl.BlockSpec((N, tc_fused, 1), lambda c: (0, c, 0)),
            ]
        out_ncl = pl.pallas_call(
            kern,
            out_shape=jax.ShapeDtypeStruct((N, C, L), x.dtype),
            grid=(C // tc_fused,),
            in_specs=in_specs,
            out_specs=pl.BlockSpec((N, tc_fused, L), lambda c: (0, c, 0)),
            compiler_params=pltpu.CompilerParams(
                dimension_semantics=("parallel",),
                vmem_limit_bytes=vmem_limit),
        )(*operands)
        return out_ncl.reshape(N, C, H, W)

    # ----------------- two-pass path (stats + streaming affine) -----------------
    tc, tl, tl_acc = _pick_two_pass_tiles(N, C, L, itemsize, c_align, budget)
    n_fold = tl // tl_acc

    sums, sqs = pl.pallas_call(
        functools.partial(_cbn_stats_kernel, n_fold=n_fold, tl_acc=tl_acc),
        out_shape=(jax.ShapeDtypeStruct((C, 1), jnp.float32),
                   jax.ShapeDtypeStruct((C, 1), jnp.float32)),
        grid=(C // tc, N, L // tl),
        in_specs=[pl.BlockSpec((1, tc, tl), lambda c, n, l: (n, c, l))],
        out_specs=(pl.BlockSpec((tc, 1), lambda c, n, l: (c, 0)),
                   pl.BlockSpec((tc, 1), lambda c, n, l: (c, 0))),
        scratch_shapes=[pltpu.VMEM((tc, tl_acc), jnp.float32),
                        pltpu.VMEM((tc, tl_acc), jnp.float32)],
        compiler_params=pltpu.CompilerParams(
            dimension_semantics=("parallel", "arbitrary", "arbitrary"),
            vmem_limit_bytes=vmem_limit),
    )(x_ncl)

    # Tiny (C,)/(N,C) f32 math in plain JAX: fold BN + conditional affine.
    mean = sums[:, 0] * inv_count                            # (C,)
    var = jnp.maximum(sqs[:, 0] * inv_count - mean * mean, 0.0)
    inv_std = jax.lax.rsqrt(var + eps)
    scale = gamma * inv_std[None, :]                         # (N, C) f32
    if bias:
        shift = beta - mean[None, :] * scale
    else:
        shift = -(mean[None, :] * scale)
    scale3 = scale.reshape(N, C, 1)
    shift3 = shift.reshape(N, C, 1)

    # Merged N*(C//tc) leading parallel axis -> both v7x TensorCores get work
    # even when N is 1/odd or C//tc == 1.
    cb = C // tc
    out_ncl = pl.pallas_call(
        _cbn_affine_kernel,
        out_shape=jax.ShapeDtypeStruct((N, C, L), x.dtype),
        grid=(N * cb, L // tl),
        in_specs=[
            pl.BlockSpec((1, tc, tl), lambda g, l: (g // cb, g % cb, l)),
            pl.BlockSpec((1, tc, 1), lambda g, l: (g // cb, g % cb, 0)),
            pl.BlockSpec((1, tc, 1), lambda g, l: (g // cb, g % cb, 0)),
        ],
        out_specs=pl.BlockSpec((1, tc, tl), lambda g, l: (g // cb, g % cb, l)),
        compiler_params=pltpu.CompilerParams(
            dimension_semantics=("parallel", "parallel"),
            vmem_limit_bytes=vmem_limit),
    )(x_ncl, scale3, shift3)
    return out_ncl.reshape(N, C, H, W)


# ---------------------------------------------------------------------------
# Pure-JAX reference (mirrors the PyTorch forward, training-mode BN)
# ---------------------------------------------------------------------------
def _reference(x, y, embed_weight, *, num_features, bias=True, eps=1e-5):
    mean = jnp.mean(x, axis=(0, 2, 3), keepdims=True)
    var = jnp.mean((x - mean) ** 2, axis=(0, 2, 3), keepdims=True)
    out = (x - mean) / jnp.sqrt(var + eps)
    emb = embed_weight[y]
    if bias:
        gamma = emb[:, :num_features].reshape(-1, num_features, 1, 1)
        beta = emb[:, num_features:].reshape(-1, num_features, 1, 1)
        return gamma * out + beta
    gamma = emb.reshape(-1, num_features, 1, 1)
    return gamma * out


if __name__ == "__main__":
    key = jax.random.PRNGKey(0)
    k_x, k_emb, k_y = jax.random.split(key, 3)

    N, C, H, W = 2, 4, 16, 16
    num_classes = 10

    x = jax.random.normal(k_x, (N, C, H, W), dtype=jnp.float32)
    y = jax.random.randint(k_y, (N,), 0, num_classes, dtype=jnp.int32)

    # Embedding init matching the PyTorch module: gamma half ~ U[0,1), beta half = 0.
    gamma_init = jax.random.uniform(k_emb, (num_classes, C), dtype=jnp.float32)
    beta_init = jnp.zeros((num_classes, C), dtype=jnp.float32)
    embed_w_bias = jnp.concatenate([gamma_init, beta_init], axis=1)   # (K, 2C)

    ref = _reference(x, y, embed_w_bias, num_features=C, bias=True)

    # (1) fused single-read path (default at these sizes).
    out_fused = conditional_batch_norm_2d(x, y, embed_w_bias,
                                          num_features=C, bias=True)
    out_fused = jax.block_until_ready(out_fused)
    assert out_fused.shape == (N, C, H, W)
    assert jnp.allclose(out_fused, ref, atol=1e-4, rtol=1e-4)

    # (2) two-pass (stats + streaming affine) path, forced via a zero budget.
    out_2p = conditional_batch_norm_2d(x, y, embed_w_bias, num_features=C,
                                       bias=True, max_fused_block_bytes=0)
    out_2p = jax.block_until_ready(out_2p)
    assert jnp.allclose(out_2p, ref, atol=1e-4, rtol=1e-4)

    # (3) bias=False variant (gamma-only embedding, no beta operand).
    out_nb = conditional_batch_norm_2d(x, y, gamma_init,
                                       num_features=C, bias=False)
    out_nb = jax.block_until_ready(out_nb)
    ref_nb = _reference(x, y, gamma_init, num_features=C, bias=False)
    assert jnp.allclose(out_nb, ref_nb, atol=1e-4, rtol=1e-4)

    print("KERNEL_OK")
</pallas_src>

<mosaic_0001>
module attributes {stable_mosaic.version = 11 : i64} {
  func.func @_cbn_fused_kernel(%arg0: i32, %arg1: memref<2x4x256xf32, #tpu.memory_space<vmem>>, %arg2: memref<2x4x1xf32, #tpu.memory_space<vmem>>, %arg3: memref<2x4x1xf32, #tpu.memory_space<vmem>>, %arg4: memref<2x4x256xf32, #tpu.memory_space<vmem>>) attributes {dimension_semantics = [#tpu.dimension_semantics<parallel>], iteration_bounds = array<i64: 1>, scalar_prefetch = 0 : i64, scratch_operands = 0 : i64, tpu.core_type = #tpu.core_type<tc>, window_params = [{transform_indices = @transform_0, window_bounds = array<i64: 2, 4, 256>}, {transform_indices = @transform_1, window_bounds = array<i64: 2, 4, 1>}, {transform_indices = @transform_2, window_bounds = array<i64: 2, 4, 1>}, {transform_indices = @transform_3, window_bounds = array<i64: 2, 4, 256>}]} {
    %c0 = arith.constant 0 : index
    %c0_0 = arith.constant 0 : index
    %c0_1 = arith.constant 0 : index
    %0 = vector.load %arg1[%c0, %c0_0, %c0_1] : memref<2x4x256xf32, #tpu.memory_space<vmem>>, vector<2x4x256xf32>
    %cst = arith.constant dense<0.000000e+00> : vector<4x256xf32>
    %1 = vector.multi_reduction <add>, %0, %cst [0] : vector<2x4x256xf32> to vector<4x256xf32>
    %2 = vector.shape_cast %1 : vector<4x256xf32> to vector<1x4x256xf32>
    %3 = arith.mulf %0, %0 : vector<2x4x256xf32>
    %cst_2 = arith.constant dense<0.000000e+00> : vector<4x256xf32>
    %4 = vector.multi_reduction <add>, %3, %cst_2 [0] : vector<2x4x256xf32> to vector<4x256xf32>
    %5 = vector.shape_cast %4 : vector<4x256xf32> to vector<1x4x256xf32>
    %cst_3 = arith.constant dense<0.000000e+00> : vector<1x4xf32>
    %6 = vector.multi_reduction <add>, %2, %cst_3 [2] : vector<1x4x256xf32> to vector<1x4xf32>
    %7 = vector.shape_cast %6 : vector<1x4xf32> to vector<1x4x1xf32>
    %cst_4 = arith.constant 0.001953125 : f32
    %8 = vector.broadcast %cst_4 : f32 to vector<1x4x1xf32>
    %9 = arith.mulf %7, %8 : vector<1x4x1xf32>
    %cst_5 = arith.constant dense<0.000000e+00> : vector<1x4xf32>
    %10 = vector.multi_reduction <add>, %5, %cst_5 [2] : vector<1x4x256xf32> to vector<1x4xf32>
    %11 = vector.shape_cast %10 : vector<1x4xf32> to vector<1x4x1xf32>
    %cst_6 = arith.constant 0.001953125 : f32
    %12 = vector.broadcast %cst_6 : f32 to vector<1x4x1xf32>
    %13 = arith.mulf %11, %12 : vector<1x4x1xf32>
    %14 = arith.mulf %9, %9 : vector<1x4x1xf32>
    %15 = arith.subf %13, %14 : vector<1x4x1xf32>
    %cst_7 = arith.constant 0.000000e+00 : f32
    %16 = vector.broadcast %cst_7 : f32 to vector<1x4x1xf32>
    %17 = arith.maximumf %15, %16 : vector<1x4x1xf32>
    %cst_8 = arith.constant 9.99999974E-6 : f32
    %18 = vector.broadcast %cst_8 : f32 to vector<1x4x1xf32>
    %19 = arith.addf %17, %18 : vector<1x4x1xf32>
    %20 = math.rsqrt %19 : vector<1x4x1xf32>
    %c0_9 = arith.constant 0 : index
    %c0_10 = arith.constant 0 : index
    %c0_11 = arith.constant 0 : index
    %21 = vector.load %arg2[%c0_9, %c0_10, %c0_11] : memref<2x4x1xf32, #tpu.memory_space<vmem>>, vector<2x4x1xf32>
    %22 = vector.broadcast %20 : vector<1x4x1xf32> to vector<2x4x1xf32>
    %23 = arith.mulf %21, %22 : vector<2x4x1xf32>
    %c0_12 = arith.constant 0 : index
    %c0_13 = arith.constant 0 : index
    %c0_14 = arith.constant 0 : index
    %24 = vector.load %arg3[%c0_12, %c0_13, %c0_14] : memref<2x4x1xf32, #tpu.memory_space<vmem>>, vector<2x4x1xf32>
    %25 = vector.broadcast %9 : vector<1x4x1xf32> to vector<2x4x1xf32>
    %26 = arith.mulf %25, %23 : vector<2x4x1xf32>
    %27 = arith.subf %24, %26 : vector<2x4x1xf32>
    %28 = vector.broadcast %23 : vector<2x4x1xf32> to vector<2x4x256xf32>
    %29 = arith.mulf %0, %28 : vector<2x4x256xf32>
    %30 = vector.broadcast %27 : vector<2x4x1xf32> to vector<2x4x256xf32>
    %31 = arith.addf %29, %30 : vector<2x4x256xf32>
    %c0_15 = arith.constant 0 : index
    %c0_16 = arith.constant 0 : index
    %c0_17 = arith.constant 0 : index
    %32 = vector.load %arg4[%c0_15, %c0_16, %c0_17] : memref<2x4x256xf32, #tpu.memory_space<vmem>>, vector<2x4x256xf32>
    tpu.vector_store %arg4[%c0_15, %c0_16, %c0_17], %31 {strides = array<i32>} : memref<2x4x256xf32, #tpu.memory_space<vmem>>, vector<2x4x256xf32>,
    return
  }
  func.func @transform_0(%arg0: i32) -> (i32, i32, i32) {
    %c0_i32 = arith.constant 0 : i32
    %c0_i32_0 = arith.constant 0 : i32
    %c0_i32_1 = arith.constant 0 : i32
    return %c0_i32, %arg0, %c0_i32_0 : i32, i32, i32
  }
  func.func @transform_1(%arg0: i32) -> (i32, i32, i32) {
    %c0_i32 = arith.constant 0 : i32
    %c0_i32_0 = arith.constant 0 : i32
    %c0_i32_1 = arith.constant 0 : i32
    return %c0_i32, %arg0, %c0_i32_0 : i32, i32, i32
  }
  func.func @transform_2(%arg0: i32) -> (i32, i32, i32) {
    %c0_i32 = arith.constant 0 : i32
    %c0_i32_0 = arith.constant 0 : i32
    %c0_i32_1 = arith.constant 0 : i32
    return %c0_i32, %arg0, %c0_i32_0 : i32, i32, i32
  }
  func.func @transform_3(%arg0: i32) -> (i32, i32, i32) {
    %c0_i32 = arith.constant 0 : i32
    %c0_i32_0 = arith.constant 0 : i32
    %c0_i32_1 = arith.constant 0 : i32
    return %c0_i32, %arg0, %c0_i32_0 : i32, i32, i32
  }
}

</mosaic_0001>

<bundles_post_ra>
// kernel: tpu_custom_call.1
= control target key start
LH: loop header
LB: loop body
LE: loop exit
PB: predicated region body
PF: predicated region fallthrough
CT: control target
= control target key end

     0   :  { %vm23_vm0 = vcmask 1043456   ;;  %s259_s0 = inlined_call_operand.vmem [shape: f32[2,4,256], index: 0, kind: input, shape index: {}]   ;;  %s260_s1 = inlined_call_operand.vmem [shape: f32[2,4,1], index: 1, kind: input, shape index: {}]   ;;  %s261_s2 = inlined_call_operand.vmem [shape: f32[2,4,1], index: 2, kind: input, shape index: {}]   ;;  %s262_s3 = inlined_call_operand.hbm [shape: f32[2,4,256], index: 3, kind: output, shape index: {}]  }
   0x1   :  { %v204_v0 = vld [vmem:[%s259_s0] sm:$0xff]  ;;  %v209_v1 = vld [vmem:[%s259_s0 + $0x8] sm:$0xff] }
   0x2   :  { %8 = vsyncpa [#allocation3], 0  ;;  %v19_v2 = vcombine.high %v204_v0, %v204_v0  ;;  %v20_v3 = vcombine.high %v209_v1, %v209_v1  ;;  %v24_v4 = vsel %vm23_vm0, %v204_v0, 0.0  ;;  %v25_v5 = vsel %vm23_vm0, %v209_v1, 0.0  ;;  %v61_v35 = vld [vmem:[%s260_s1] sm:$0xf] }
   0x3   :  { %v26_v6 = vadd.f32 %v25_v5, %v24_v4  ;;  %v30_v7 = vmul.f32 %v204_v0, %v204_v0  ;;  %v31_v8 = vmul.f32 %v209_v1, %v209_v1  ;;  %v176_v26 = vmov 0   ;;  %v62_v36 = vld [vmem:[%s260_s1 + $0x4] sm:$0xf]  ;;  %v65_v40 = vld [vmem:[%s261_s2] sm:$0xf]  ;;  %s178_s1 = smov [#allocation2]  }
   0x4   :  { %v27_v9 = vsel %vm23_vm0, %v19_v2, 0.0  ;;  %v28_v10 = vsel %vm23_vm0, %v20_v3, 0.0  ;;  %146 = vset.pattern.permute.xlu1 %v176_v26  ;;  %147 = vset.pattern.permute.xlu0 %v176_v26  ;;  %v66_v44 = vld [vmem:[%s261_s2 + $0x4] sm:$0xf]  ;;  %v177_v46 = vmov 839922192   ;;  %v82_v48 = vlaneseq }
   0x5   :  { %v29_v11 = vadd.f32 %v28_v10, %v27_v9  ;;  %v44_v12 = vsel %vm23_vm0, %v26_v6, 0.0  ;;  %v34_v13 = vcombine.high %v30_v7, %v30_v7  ;;  %v35_v14 = vcombine.high %v31_v8, %v31_v8  ;;  %s130_s2 = sshll.u32 %s178_s1, 4  ;;  %s131_s2 = int_to_ptr.vmem [resolvable:$true] %s130_s2 }
   0x6   :  { %v38_v15 = vsel %vm23_vm0, %v30_v7, 0.0  ;;  %v39_v16 = vsel %vm23_vm0, %v31_v8, 0.0  ;;  %v80_v47 = vunpack.c.l.s4 %v177_v46  ;;  %v83_v50 = vshrl.u32 %v82_v48, 7  ;;  %s152_s23 = scalar_lea.vmem %s131_s2, 256  ;;  %p157_p1 = scmp.lt.s32.totalorder %s131_s2, %s131_s2 }
   0x7   :  { %v45_v17 = vsel %vm23_vm0, %v29_v11, 0.0  ;;  %v40_v18 = vadd.f32 %v39_v16, %v38_v15  ;;  %v41_v19 = vsel %vm23_vm0, %v34_v13, 0.0  ;;  %v42_v20 = vsel %vm23_vm0, %v35_v14, 0.0  ;;  %p153_p0 = scmp.ne.s32.totalorder %s131_s2, %s152_s23  ;;  %p158_p2 = scmp.lt.s32.totalorder %s152_s23, %s152_s23 }
   0x8   :  { %v46_v21 = vadd.f32 %v45_v17, %v44_v12  ;;  %v43_v22 = vadd.f32 %v42_v20, %v41_v19  ;;  %v81_v49 = vunpack.c.0.s8 %v80_v47 }
   0x9   :  { %v50_v23 = vsel %vm23_vm0, %v40_v18, 0.0  ;;  %p159_p3 = por %p158_p2, %p157_p1 }
   0xa   :  { %47 = vadd.xlane.f32.xlu0 %v46_v21  ;;  %v51_v24 = vsel %vm23_vm0, %v43_v22, 0.0  ;;  %v84_v51 = vsub.s32 %v81_v49, %v83_v50 }
   0xb   :  { %v52_v25 = vadd.f32 %v51_v24, %v50_v23  ;;  %p160_p4 = pnand %p159_p3, %p153_p0 }
   0xe   :  { %53 = vadd.xlane.f32.xlu0 %v52_v25 }
  0x97   :  { %v48_v27 = vpop.xlane.xlu0 %47 }
  0x98   :  { %v49_v28 = vmul.f32 0.001953125, %v48_v27 }
  0x9a   :  { %v56_v30 = vmul.f32 %v49_v28, %v49_v28 }
  0x9b   :  { %v54_v29 = vpop.xlane.xlu0 %53 }
  0x9c   :  { %v55_v31 = vmul.f32 0.001953125, %v54_v29 }
  0x9e   :  { %v57_v32 = vsub.f32 %v55_v31, %v56_v30 }
  0xa0   :  { %v58_v33 = vmax.f32 %v57_v32, 0.0 }
  0xa2   :  { %v59_v34 = vadd.f32 1e-05, %v58_v33 }
  0xa4   :  { %150 = vrsqrt.f32 %v59_v34 }
  0xae   :  { %v151_v37 = vpop.eup %150 }
  0xaf   :  { %v63_v38 = vmul.f32 %v151_v37, %v61_v35  ;;  %v64_v39 = vmul.f32 %v151_v37, %v62_v36 }
  0xb1   :  { %73 = vperm.xlu1 %146, %v63_v38   ;;  %v67_v41 = vmul.f32 %v63_v38, %v49_v28  ;;  %v68_v43 = vmul.f32 %v64_v39, %v49_v28 }
  0xb3   :  { %v69_v42 = vsub.f32 %v65_v40, %v67_v41  ;;  %v70_v45 = vsub.f32 %v66_v44, %v68_v43 }
  0xb5   :  { %77 = vperm.xlu1 %146, %v64_v39   ;;  %99 = vperm.xlu0 %147, %v69_v42  }
  0xb9   :  { %103 = vperm.xlu1 %146, %v70_v45  }
 0x130   :  { %v74_v52 = vpop.permute.xlu1 %73 }
 0x131   :  { %v85_v53 = vrot.slane %v74_v52, %v84_v51 }
 0x133   :  { %v95_v56 = vmul.f32 %v85_v53, %v204_v0 }
 0x134   :  { %v78_v54 = vpop.permute.xlu1 %77  ;;  %v100_v55 = vpop.permute.xlu0 %99 }
 0x135   :  { %v92_v57 = vrot.slane %v78_v54, %v84_v51  ;;  %v111_v58 = vrot.slane %v100_v55, %v84_v51 }
 0x137   :  { %v121_v59 = vadd.f32 %v111_v58, %v95_v56  ;;  %v96_v61 = vmul.f32 %v92_v57, %v209_v1 }
 0x138   :  { %v104_v60 = vpop.permute.xlu1 %103 }
 0x139   :  { %123 = vst [vmem:[#allocation2] sm:$0xff] %v121_v59  ;;  %v118_v62 = vrot.slane %v104_v60, %v84_v51 }
 0x13b   :  { %v122_v63 = vadd.f32 %v118_v62, %v96_v61 }
 0x13d   :  { %124 = vst [vmem:[#allocation2 + $0x8] sm:$0xff] %v122_v63 }
 0x13e   :  { %163 = shalt.err (!%p160_p4)
}
 0x13f   :  { %s164_s26 = scalar_lea.hbm %s262_s3, 256 }
 0x140   :  { %p165_p5 = scmp.ne.s32.totalorder %s262_s3, %s164_s26  ;;  %p168_p6 = scmp.lt.u32.totalorder %s164_s26, %s262_s3 }
 0x142   :  { %p170_p7 = pnand %p168_p6, %p165_p5 }
 0x144   :  { %173 = shalt.err (!%p170_p7)
}
 0x145   :  { %s179_s4 = smov 128   ;;  %s180_s5 = smov 8  }
 0x146   :  { %136 = dma.vmem_to_hbm [thread:$0]  %s131_s2, 256, %s262_s3, [#allocation3], %s179_s4, %s179_s4, %s180_s5  }
 0x147   :  { %174 = dma.done.wait [#allocation3], 256  }
 0x148   :  { %175 = vsyncadd [#allocation3], 4294967040 }
 0x149   :  { %140 = vsyncpa [#allocation3], 1 }

</bundles_post_ra>
